<compile_context>
chip_gen: v7x
topology: tpu7x:2x2x1
jax: 0.10.0
libtpu: 0.0.40
codegen_flags: <defaults>
</compile_context>

<pallas_src>
import jax
import jax.numpy as jnp
from jax import lax
from jax.experimental import pallas as pl
from jax.experimental.pallas import tpu as pltpu

BN_EPS = 1e-5
LANE = 128
SUBLANE = 8


def _round_up(x, m):
    return (x + m - 1) // m * m


def _vmem_limit_bytes():
    """Per-chip VMEM request: <= 3/4 of physical, capped at 100 MiB.

    v5e/v6e (128 MiB physical) -> 96 MiB; v7x (64 MiB physical) -> 48 MiB, leaving headroom for
    compiler-internal scratch and pipeline bookkeeping.
    """
    try:
        phys = int(pltpu.get_tpu_info().vmem_capacity_bytes)
    except Exception:
        phys = 128 * 1024 * 1024
    return int(min(phys * 3 // 4, 100 * 1024 * 1024))


def _pick_tm(tm_hint, m, k, cout_p, vmem_limit, residual):
    """Largest M-tile (multiple of 8) whose double-buffered working set fits the VMEM budget."""
    per_row_p1 = 2 * (k * 2) + 2 * (cout_p * 2)          # bf16 patches + bf16 y, 2 buffers each
    per_row_p2 = 2 * (cout_p * 2) + 2 * (cout_p * 4)     # bf16 y in + f32 out, 2 buffers each
    if residual:
        per_row_p2 += 2 * (cout_p * 2)                    # bf16 residual stream
    fixed = 2 * (k * cout_p * 2) + 4 * (SUBLANE * cout_p * 4)   # weight (2 bufs) + stat blocks
    budget = int(vmem_limit * 0.8)
    tm_max = max((budget - fixed) // max(per_row_p1, per_row_p2), SUBLANE)
    tm = min(int(tm_hint), int(tm_max), _round_up(m, SUBLANE))
    return max((tm // SUBLANE) * SUBLANE, SUBLANE)


# ---------------------------------------------------------------------------
# Pass 1: conv (bf16 MXU, f32 accum) + per-tile partial batch statistics
# ---------------------------------------------------------------------------
def _conv_stats_kernel(p_ref, w_ref, y_ref, sum_ref, ssq_ref):
    # p_ref:   (TM, K)       bf16 im2col patches tile
    # w_ref:   (K,  Cout_p)  bf16 conv weight (full, constant-index)
    # y_ref:   (TM, Cout_p)  bf16 conv output tile (stats taken from the f32 accumulator first)
    # sum_ref: (8,  Cout_p)  f32 per-tile partial channel sums       (sublane-grouped)
    # ssq_ref: (8,  Cout_p)  f32 per-tile partial channel sum-of-sq  (sublane-grouped)
    y = jnp.dot(p_ref[...], w_ref[...], preferred_element_type=jnp.float32)
    y_ref[...] = y.astype(y_ref.dtype)
    tm, cp = y.shape
    yg = y.reshape(tm // SUBLANE, SUBLANE, cp)
    # Sublane-group partial sums: pure vreg-to-vreg VPU adds hidden under MXU cycles; no
    # cross-sublane XLU reduce and no resident accumulator -> grid axis stays fully parallel.
    sum_ref[...] = jnp.sum(yg, axis=0)
    ssq_ref[...] = jnp.sum(yg * yg, axis=0)


# ---------------------------------------------------------------------------
# Pass 2: normalize (+ optional residual) + ReLU -- one FMA per element
# ---------------------------------------------------------------------------
def _bn_relu_kernel(y_ref, scale_ref, shift_ref, o_ref):
    y = y_ref[...].astype(jnp.float32)
    out = y * scale_ref[...] + shift_ref[...]
    o_ref[...] = jnp.maximum(out, 0.0).astype(o_ref.dtype)


def _bn_relu_res_kernel(y_ref, scale_ref, shift_ref, res_ref, o_ref):
    y = y_ref[...].astype(jnp.float32)
    out = y * scale_ref[...] + shift_ref[...] + res_ref[...].astype(jnp.float32)
    o_ref[...] = jnp.maximum(out, 0.0).astype(o_ref.dtype)


# ---------------------------------------------------------------------------
# Wrapper
# ---------------------------------------------------------------------------
def _im2col_nchw(x, kh, kw, stride, padding):
    """x: (N, Cin, H, W) -> bf16 patches (N*Ho*Wo, Cin*kh*kw), plus (Ho, Wo).

    Cast to bf16 BEFORE materializing the kh*kw-duplicated patch matrix (halves its HBM cost);
    the MXU consumes bf16 anyway and accumulation stays f32 in the kernel.
    """
    n, cin, h, w = x.shape
    ho = (h + 2 * padding - kh) // stride + 1
    wo = (w + 2 * padding - kw) // stride + 1
    xb = x.astype(jnp.bfloat16)
    xp = jnp.pad(xb, ((0, 0), (0, 0), (padding, padding), (padding, padding)))
    cols = []
    for i in range(kh):
        for j in range(kw):
            cols.append(xp[:, :, i:i + stride * ho:stride, j:j + stride * wo:stride])
    p = jnp.stack(cols, axis=2)                            # (N, Cin, kh*kw, Ho, Wo)
    p = p.transpose(0, 3, 4, 1, 2).reshape(n * ho * wo, cin * kh * kw)
    return p, ho, wo


def conv2d_block(x, weight, bias, gamma, beta, *, stride, padding, residual=False, tm=512):
    """Forward of the PyTorch `Conv2d` module (train-mode BN semantics).

    x:      (N, Cin, H, W)  float32 NCHW
    weight: (Cout, Cin, kh, kw), bias/gamma/beta: (Cout,)
    returns (N, Cout, Ho, Wo) float32 NCHW
    `tm` is only a hint; the actual M-tile is derived from the per-chip VMEM budget.
    """
    n, cin, h, w = x.shape
    cout, _, kh, kw = weight.shape

    patches, ho, wo = _im2col_nchw(x, kh, kw, stride, padding)      # (M, K) bf16
    m = n * ho * wo
    k = cin * kh * kw

    cout_p = _round_up(cout, LANE)                # lane-dense output channels
    vmem_limit = _vmem_limit_bytes()
    tm = _pick_tm(tm, m, k, cout_p, vmem_limit, residual)
    m_pad = _round_up(m, tm)
    n_tiles = m_pad // tm
    grid = (n_tiles,)

    patches_p = jnp.pad(patches, ((0, m_pad - m), (0, 0)))          # bf16, zero rows in the pad
    w_mat = weight.reshape(cout, k).T                                # (K, Cout)
    w_mat = jnp.pad(w_mat, ((0, 0), (0, cout_p - cout))).astype(jnp.bfloat16)

    params_parallel = pltpu.CompilerParams(dimension_semantics=("parallel",),
                                           vmem_limit_bytes=vmem_limit)

    # ---- pass 1: conv + per-tile partial batch stats --------------------------------
    cost1 = pl.CostEstimate(
        flops=2 * m_pad * k * cout_p,
        transcendentals=0,
        bytes_accessed=(m_pad * k * 2                      # bf16 patches read
                        + n_tiles * k * cout_p * 2         # bf16 weight (per-tile fetch, worst case)
                        + m_pad * cout_p * 2               # bf16 y write
                        + 2 * n_tiles * SUBLANE * cout_p * 4))

    y, psum, pssq = pl.pallas_call(
        _conv_stats_kernel,
        out_shape=(jax.ShapeDtypeStruct((m_pad, cout_p), jnp.bfloat16),
                   jax.ShapeDtypeStruct((n_tiles * SUBLANE, cout_p), jnp.float32),
                   jax.ShapeDtypeStruct((n_tiles * SUBLANE, cout_p), jnp.float32)),
        grid=grid,
        in_specs=[pl.BlockSpec((tm, k), lambda i: (i, 0)),
                  pl.BlockSpec((k, cout_p), lambda i: (0, 0))],
        out_specs=(pl.BlockSpec((tm, cout_p), lambda i: (i, 0)),
                   pl.BlockSpec((SUBLANE, cout_p), lambda i: (i, 0)),
                   pl.BlockSpec((SUBLANE, cout_p), lambda i: (i, 0))),
        compiler_params=params_parallel,
        cost_estimate=cost1,
    )(patches_p, w_mat)

    # ---- fold BN into per-channel scale/shift (tiny, host-side XLA) ----------------
    # Conv bias is cancelled exactly by the batch-mean subtraction -> dropped.
    # NOTE: variance via E[y^2] - E[y]^2 in f32 can cancel when |mean| >> std for a channel;
    # the clamp guards the rsqrt.  Intentional tradeoff for a single fused stats pass.
    del bias
    inv_m = 1.0 / float(m)                       # true pixel count (padded rows contribute zero)
    sums = jnp.sum(psum, axis=0, keepdims=True)   # (1, Cout_p)
    ssq = jnp.sum(pssq, axis=0, keepdims=True)    # (1, Cout_p)
    mean = sums * inv_m
    var = jnp.maximum(ssq * inv_m - mean * mean, 0.0)
    gamma_p = jnp.pad(gamma.reshape(1, cout).astype(jnp.float32),
                      ((0, 0), (0, cout_p - cout)))
    beta_p = jnp.pad(beta.reshape(1, cout).astype(jnp.float32),
                     ((0, 0), (0, cout_p - cout)))
    scale = gamma_p * lax.rsqrt(var + BN_EPS)
    shift = beta_p - mean * scale

    # ---- pass 2: normalize (+ residual) + ReLU --------------------------------------
    in_arrays = [y, scale, shift]
    in_specs = [pl.BlockSpec((tm, cout_p), lambda i: (i, 0)),
                pl.BlockSpec((1, cout_p), lambda i: (0, 0)),
                pl.BlockSpec((1, cout_p), lambda i: (0, 0))]
    bytes2 = m_pad * cout_p * 2 + m_pad * cout_p * 4 + 2 * cout_p * 4
    flops2 = 3 * m_pad * cout_p
    if residual:
        assert cin == cout and ho == h and wo == w, "residual requires matching shapes"
        res = x.transpose(0, 2, 3, 1).reshape(m, cin).astype(jnp.bfloat16)  # bf16 residual stream
        res = jnp.pad(res, ((0, m_pad - m), (0, cout_p - cout)))
        in_arrays.append(res)
        in_specs.append(pl.BlockSpec((tm, cout_p), lambda i: (i, 0)))
        kernel = _bn_relu_res_kernel
        bytes2 += m_pad * cout_p * 2
        flops2 += m_pad * cout_p
    else:
        kernel = _bn_relu_kernel                 # no zeros tensor, no wasted DMA

    cost2 = pl.CostEstimate(flops=flops2, transcendentals=0, bytes_accessed=bytes2)

    out_flat = pl.pallas_call(
        kernel,
        out_shape=jax.ShapeDtypeStruct((m_pad, cout_p), jnp.float32),
        grid=grid,
        in_specs=in_specs,
        out_specs=pl.BlockSpec((tm, cout_p), lambda i: (i, 0)),
        compiler_params=params_parallel,
        cost_estimate=cost2,
    )(*in_arrays)

    # back to NCHW (PyTorch convention). A NHWC consumer could skip this transpose.
    return out_flat[:m, :cout].reshape(n, ho, wo, cout).transpose(0, 3, 1, 2)


# ---------------------------------------------------------------------------
# Reference + test harness
# ---------------------------------------------------------------------------
def _reference(x, weight, bias, gamma, beta, *, stride, padding, residual=False):
    """Pure-JAX reference mirroring PyTorch semantics (train-mode BN)."""
    y = lax.conv_general_dilated(
        x, weight, (stride, stride), [(padding, padding), (padding, padding)],
        dimension_numbers=("NCHW", "OIHW", "NCHW"))
    y = y + bias[None, :, None, None]
    mean = y.mean(axis=(0, 2, 3), keepdims=True)
    var = ((y - mean) ** 2).mean(axis=(0, 2, 3), keepdims=True)
    out = (y - mean) / jnp.sqrt(var + BN_EPS)
    out = out * gamma[None, :, None, None] + beta[None, :, None, None]
    if residual:
        out = out + x
    return jnp.maximum(out, 0.0)


def _init_params(key, cin, cout, kh, kw):
    kw_key, kb_key = jax.random.split(key)
    fan_in = cin * kh * kw
    bound = 1.0 / jnp.sqrt(fan_in)
    weight = jax.random.uniform(kw_key, (cout, cin, kh, kw), jnp.float32, -bound, bound)
    bias = jax.random.uniform(kb_key, (cout,), jnp.float32, -bound, bound)
    gamma = jnp.ones((cout,), jnp.float32)
    beta = jnp.zeros((cout,), jnp.float32)
    return weight, bias, gamma, beta


if __name__ == "__main__":
    key = jax.random.PRNGKey(0)
    kx, kp1, kp2 = jax.random.split(key, 3)

    # Tolerance reflects the intentional bf16 streams (patches, weights, y intermediate, residual);
    # accumulation and BN statistics remain f32.
    RTOL = ATOL = 3e-2

    # Case 1: Conv2d(cin=4, cout=8, kernel=3, stride=1, padding=1, residual=False)
    x1 = jax.random.normal(kx, (2, 4, 16, 16), jnp.float32)
    w1, b1, g1, be1 = _init_params(kp1, 4, 8, 3, 3)
    out1 = conv2d_block(x1, w1, b1, g1, be1, stride=1, padding=1, residual=False)
    ref1 = _reference(x1, w1, b1, g1, be1, stride=1, padding=1, residual=False)
    jax.block_until_ready(out1)
    assert out1.shape == (2, 8, 16, 16)
    assert jnp.allclose(out1, ref1, rtol=RTOL, atol=ATOL), "case1 mismatch"

    # Case 2: residual path, Conv2d(cin=8, cout=8, kernel=3, stride=1, padding=1, residual=True)
    x2 = jax.random.normal(kx, (2, 8, 16, 16), jnp.float32)
    w2, b2, g2, be2 = _init_params(kp2, 8, 8, 3, 3)
    out2 = conv2d_block(x2, w2, b2, g2, be2, stride=1, padding=1, residual=True)
    ref2 = _reference(x2, w2, b2, g2, be2, stride=1, padding=1, residual=True)
    jax.block_until_ready(out2)
    assert out2.shape == (2, 8, 16, 16)
    assert jnp.allclose(out2, ref2, rtol=RTOL, atol=ATOL), "case2 mismatch"

    print("KERNEL_OK")
</pallas_src>

<mosaic_0001>
module attributes {stable_mosaic.version = 11 : i64} {
  func.func @_conv_stats_kernel(%arg0: i32, %arg1: memref<512x36xbf16, #tpu.memory_space<vmem>>, %arg2: memref<36x128xbf16, #tpu.memory_space<vmem>>, %arg3: memref<512x128xbf16, #tpu.memory_space<vmem>>, %arg4: memref<8x128xf32, #tpu.memory_space<vmem>>, %arg5: memref<8x128xf32, #tpu.memory_space<vmem>>) attributes {dimension_semantics = [#tpu.dimension_semantics<parallel>], iteration_bounds = array<i64: 1>, scalar_prefetch = 0 : i64, scratch_operands = 0 : i64, tpu.core_type = #tpu.core_type<tc>, window_params = [{transform_indices = @transform_0, window_bounds = array<i64: 512, 36>}, {pipeline_mode = #tpu.pipeline_mode<synchronous>, transform_indices = @transform_1, window_bounds = array<i64: 36, 128>}, {transform_indices = @transform_2, window_bounds = array<i64: 512, 128>}, {transform_indices = @transform_3, window_bounds = array<i64: 8, 128>}, {transform_indices = @transform_4, window_bounds = array<i64: 8, 128>}]} {
    %c0 = arith.constant 0 : index
    %c0_0 = arith.constant 0 : index
    %0 = vector.load %arg1[%c0, %c0_0] : memref<512x36xbf16, #tpu.memory_space<vmem>>, vector<512x36xbf16>
    %c0_1 = arith.constant 0 : index
    %c0_2 = arith.constant 0 : index
    %1 = vector.load %arg2[%c0_1, %c0_2] : memref<36x128xbf16, #tpu.memory_space<vmem>>, vector<36x128xbf16>
    %cst = arith.constant dense<0.000000e+00> : vector<512x128xf32>
    %2 = tpu.matmul %0, %1, %cst {dimension_numbers = #tpu.dot_dimension_numbers<[1], [0], [0], [1], [0, 0, 1, 1], [], []>} : vector<512x36xbf16>, vector<36x128xbf16>, vector<512x128xf32> -> vector<512x128xf32>
    %3 = arith.truncf %2 : vector<512x128xf32> to vector<512x128xbf16>
    %c0_3 = arith.constant 0 : index
    %c0_4 = arith.constant 0 : index
    %4 = vector.load %arg3[%c0_3, %c0_4] : memref<512x128xbf16, #tpu.memory_space<vmem>>, vector<512x128xbf16>
    tpu.vector_store %arg3[%c0_3, %c0_4], %3 {strides = array<i32>} : memref<512x128xbf16, #tpu.memory_space<vmem>>, vector<512x128xbf16>,
    %5 = vector.shape_cast %2 : vector<512x128xf32> to vector<64x8x128xf32>
    %cst_5 = arith.constant dense<0.000000e+00> : vector<8x128xf32>
    %6 = vector.multi_reduction <add>, %5, %cst_5 [0] : vector<64x8x128xf32> to vector<8x128xf32>
    %c0_6 = arith.constant 0 : index
    %c0_7 = arith.constant 0 : index
    %7 = vector.load %arg4[%c0_6, %c0_7] : memref<8x128xf32, #tpu.memory_space<vmem>>, vector<8x128xf32>
    tpu.vector_store %arg4[%c0_6, %c0_7], %6 {strides = array<i32>} : memref<8x128xf32, #tpu.memory_space<vmem>>, vector<8x128xf32>,
    %8 = arith.mulf %5, %5 : vector<64x8x128xf32>
    %cst_8 = arith.constant dense<0.000000e+00> : vector<8x128xf32>
    %9 = vector.multi_reduction <add>, %8, %cst_8 [0] : vector<64x8x128xf32> to vector<8x128xf32>
    %c0_9 = arith.constant 0 : index
    %c0_10 = arith.constant 0 : index
    %10 = vector.load %arg5[%c0_9, %c0_10] : memref<8x128xf32, #tpu.memory_space<vmem>>, vector<8x128xf32>
    tpu.vector_store %arg5[%c0_9, %c0_10], %9 {strides = array<i32>} : memref<8x128xf32, #tpu.memory_space<vmem>>, vector<8x128xf32>,
    return
  }
  func.func @transform_0(%arg0: i32) -> (i32, i32) {
    %c0_i32 = arith.constant 0 : i32
    %c0_i32_0 = arith.constant 0 : i32
    return %arg0, %c0_i32 : i32, i32
  }
  func.func @transform_1(%arg0: i32) -> (i32, i32) {
    %c0_i32 = arith.constant 0 : i32
    %c0_i32_0 = arith.constant 0 : i32
    %c0_i32_1 = arith.constant 0 : i32
    return %c0_i32, %c0_i32_0 : i32, i32
  }
  func.func @transform_2(%arg0: i32) -> (i32, i32) {
    %c0_i32 = arith.constant 0 : i32
    %c0_i32_0 = arith.constant 0 : i32
    return %arg0, %c0_i32 : i32, i32
  }
  func.func @transform_3(%arg0: i32) -> (i32, i32) {
    %c0_i32 = arith.constant 0 : i32
    %c0_i32_0 = arith.constant 0 : i32
    return %arg0, %c0_i32 : i32, i32
  }
  func.func @transform_4(%arg0: i32) -> (i32, i32) {
    %c0_i32 = arith.constant 0 : i32
    %c0_i32_0 = arith.constant 0 : i32
    return %arg0, %c0_i32 : i32, i32
  }
}

</mosaic_0001>

<bundles_post_ra>
// kernel: tpu_custom_call.1
= control target key start
LH: loop header
LB: loop body
LE: loop exit
PB: predicated region body
PF: predicated region fallthrough
CT: control target
= control target key end

     0   :  { %10 = vsyncpa [#allocation3], 0  ;;  %s2220_s0 = inlined_call_operand.hbm [shape: bf16[512,36], index: 0, kind: input, shape index: {}]   ;;  %s2221_s1 = inlined_call_operand.hbm [shape: bf16[36,128], index: 1, kind: input, shape index: {}]   ;;  %s2222_s2 = inlined_call_operand.hbm [shape: bf16[512,128], index: 2, kind: output, shape index: {0}]   ;;  %s2223_s3 = inlined_call_operand.hbm [shape: f32[8,128], index: 3, kind: output, shape index: {1}]   ;;  %s2224_s4 = inlined_call_operand.hbm [shape: f32[8,128], index: 4, kind: output, shape index: {2}]  }
   0x1   :  { %11 = vsyncpa [#allocation6], 0 }
   0x2   :  { %12 = vsyncpa [#allocation4], 0 }
   0x3   :  { %13 = vsyncpa [#allocation9], 0  ;;  %s1895_s15 = smov [#allocation2]   ;;  %s1777_s19 = scalar_lea.hbm %s2220_s0, 4096 }
   0x4   :  { %s19_s16 = sshll.u32 %s1895_s15, 4  ;;  %p1778_p0 = scmp.ne.s32.totalorder %s2220_s0, %s1777_s19  ;;  %s20_s16 = int_to_ptr.vmem [resolvable:$true] %s19_s16 }
   0x5   :  { %p1781_p1 = scmp.lt.u32.totalorder %s1777_s19, %s2220_s0 }
   0x7   :  { %p1783_p2 = pnand %p1781_p1, %p1778_p0 }
   0x9   :  { %1786 = shalt.err (!%p1783_p2)
}
   0xa   :  { %s1787_s24 = scalar_lea.vmem %s20_s16, 4096  ;;  %p1792_p4 = scmp.lt.s32.totalorder %s20_s16, %s20_s16 }
   0xb   :  { %p1788_p3 = scmp.ne.s32.totalorder %s20_s16, %s1787_s24  ;;  %p1793_p5 = scmp.lt.s32.totalorder %s1787_s24, %s1787_s24 }
   0xd   :  { %p1794_p6 = por %p1793_p5, %p1792_p4 }
   0xf   :  { %p1795_p7 = pnand %p1794_p6, %p1788_p3 }
  0x11   :  { %1798 = shalt.err (!%p1795_p7)
}
  0x12   :  { %s1896_s25 = smov 64   ;;  %s1897_s26 = smov 4  }
  0x13   :  { %25 = dma.hbm_to_vmem [thread:$0]  %s2220_s0, 4096, %s20_s16, [#allocation3], %s1896_s25, %s1896_s25, %s1897_s26  }
  0x14   :  { %s1898_s29 = smov [#allocation5]   ;;  %s1799_s7 = scalar_lea.hbm %s2221_s1, 320 }
  0x15   :  { %s31_s30 = sshll.u32 %s1898_s29, 4  ;;  %p1800_p8 = scmp.ne.s32.totalorder %s2221_s1, %s1799_s7  ;;  %s32_s30 = int_to_ptr.vmem [resolvable:$true] %s31_s30 }
  0x16   :  { %p1803_p9 = scmp.lt.u32.totalorder %s1799_s7, %s2221_s1 }
  0x18   :  { %p1805_p10 = pnand %p1803_p9, %p1800_p8 }
  0x1a   :  { %1808 = shalt.err (!%p1805_p10)
}
  0x1b   :  { %s1809_s12 = scalar_lea.vmem %s32_s30, 320  ;;  %p1814_p12 = scmp.lt.s32.totalorder %s32_s30, %s32_s30 }
  0x1c   :  { %p1810_p11 = scmp.ne.s32.totalorder %s32_s30, %s1809_s12  ;;  %p1815_p13 = scmp.lt.s32.totalorder %s1809_s12, %s1809_s12 }
  0x1e   :  { %p1816_p0 = por %p1815_p13, %p1814_p12 }
  0x20   :  { %p1817_p1 = pnand %p1816_p0, %p1810_p11 }
  0x22   :  { %1820 = shalt.err (!%p1817_p1)
}
  0x23   :  { %37 = dma.hbm_to_vmem [thread:$0]  %s2221_s1, 320, %s32_s30, [#allocation6], %s1896_s25, %s1896_s25, %s1897_s26  }
  0x24   :  { %1887 = dma.done.wait [#allocation3], 4096  }
  0x25   :  { %1888 = vsyncadd [#allocation3], 4294963200 }
  0x26   :  { %1889 = dma.done.wait [#allocation6], 320  }
  0x27   :  { %1890 = vsyncadd [#allocation6], 4294966976  ;;  %v1742_v0 = vld [vmem:[#allocation5] sm:$0xff]   ;;  %v1743_v1 = vld [vmem:[#allocation5 + $0x8] sm:$0xff]   ;;  %vm289_vm0 = vcmask 293888   ;;  %vm386_vm1 = vcmask 1041408  }
  0x28   :  { %1657 = vmatprep.subr.bf16.mxu0 %v1742_v0  ;;  %v1744_v2 = vld [vmem:[#allocation5 + $0x10] ss:$0 sps:$4 sm:$0x33]   ;;  %v1745_v3 = vld [vmem:[#allocation2] sm:$0xff]   ;;  %1727 = vmatprep.subr.bf16.mxu1 %v1742_v0  ;;  %v1746_v5 = vld [vmem:[#allocation2 + $0x8] sm:$0xff]   ;;  %s1899_s1 = smov [#allocation7]  }
  0x29   :  { %1658 = vmatpush3.bf16.msra.mxu0 %v1742_v0  ;;  %1730 = vmatpush3.bf16.msra.mxu1 %v1742_v0  ;;  %v388_v4 = vsel %vm386_vm1, %v1744_v2, 0  ;;  %v1747_v6 = vld [vmem:[#allocation2 + $0x10] sm:$0xff]   ;;  %v1748_v7 = vld [vmem:[#allocation2 + $0x18] sm:$0xff]   ;;  %v1749_v8 = vld [vmem:[#allocation2 + $0x20] sm:$0xff]   ;;  %s1196_s14 = sshll.u32 %s1899_s1, 4  ;;  %s1197_s14 = int_to_ptr.vmem [resolvable:$true] %s1196_s14 }
  0x2a   :  { %1659 = vmatprep.subr.bf16.mxu0 %v1743_v1  ;;  %1663 = vmatprep.mubr.msk.bf16.mxu0 %vm289_vm0, %v1745_v3  ;;  %v1761_v9 = vld [vmem:[#allocation2 + $0x80] sm:$0xff]   ;;  %v1762_v10 = vld [vmem:[#allocation2 + $0x88] sm:$0xff]   ;;  %v1763_v11 = vld [vmem:[#allocation2 + $0x90] sm:$0xff]   ;;  %s1821_s15 = scalar_lea.vmem %s1197_s14, 4096  ;;  %p1826_p3 = scmp.lt.s32.totalorder %s1197_s14, %s1197_s14 }
  0x2b   :  { %1728 = vmatprep.subr.bf16.mxu1 %v1743_v1  ;;  %1695 = vmatprep.mubr.msk.bf16.mxu1 %vm289_vm0, %v1761_v9  ;;  %v1750_v12 = vld [vmem:[#allocation2 + $0x28] sm:$0xff]   ;;  %v1751_v13 = vld [vmem:[#allocation2 + $0x30] sm:$0xff]   ;;  %v1764_v14 = vld [vmem:[#allocation2 + $0x98] sm:$0xff]   ;;  %p1822_p2 = scmp.ne.s32.totalorder %s1197_s14, %s1821_s15  ;;  %p1827_p4 = scmp.lt.s32.totalorder %s1821_s15, %s1821_s15 }
  0x2c   :  { %v1765_v15 = vld [vmem:[#allocation2 + $0xa0] sm:$0xff]   ;;  %v1752_v16 = vld [vmem:[#allocation2 + $0x38] sm:$0xff]   ;;  %v1766_v17 = vld [vmem:[#allocation2 + $0xa8] sm:$0xff]  }
  0x2d   :  { %1660 = vmatpush3.bf16.msra.mxu0 %v1743_v1  ;;  %1731 = vmatpush3.bf16.msra.mxu1 %v1743_v1  ;;  %v1753_v18 = vld [vmem:[#allocation2 + $0x40] sm:$0xff]   ;;  %v1767_v19 = vld [vmem:[#allocation2 + $0xb0] sm:$0xff]   ;;  %v1754_v20 = vld [vmem:[#allocation2 + $0x48] sm:$0xff]   ;;  %p1828_p5 = por %p1827_p4, %p1826_p3 }
  0x2e   :  { %1733 = vmatprep.subr.msk.bf16.mxu0 %vm386_vm1, %v1744_v2  ;;  %1734 = vmatprep.subr.msk.bf16.mxu1 %vm386_vm1, %v1744_v2  ;;  %v1768_v21 = vld [vmem:[#allocation2 + $0xb8] sm:$0xff]   ;;  %v1755_v22 = vld [vmem:[#allocation2 + $0x50] sm:$0xff]   ;;  %v1769_v23 = vld [vmem:[#allocation2 + $0xc0] sm:$0xff]  }
  0x2f   :  { %v1756_v24 = vld [vmem:[#allocation2 + $0x58] sm:$0xff]   ;;  %v1770_v25 = vld [vmem:[#allocation2 + $0xc8] sm:$0xff]   ;;  %v1757_v26 = vld [vmem:[#allocation2 + $0x60] sm:$0xff]   ;;  %p1829_p6 = pnand %p1828_p5, %p1822_p2 }
  0x30   :  { %v1771_v27 = vld [vmem:[#allocation2 + $0xd0] sm:$0xff]   ;;  %v1758_v28 = vld [vmem:[#allocation2 + $0x68] sm:$0xff]   ;;  %v1772_v29 = vld [vmem:[#allocation2 + $0xd8] sm:$0xff]  }
  0x31   :  { %1662 = vmatpush3.bf16.msra.mxu0 %v388_v4  ;;  %1732 = vmatpush3.bf16.msra.mxu1 %v388_v4  ;;  %v1759_v30 = vld [vmem:[#allocation2 + $0x70] sm:$0xff]   ;;  %v1773_v31 = vld [vmem:[#allocation2 + $0xe0] sm:$0xff]   ;;  %v1760_v32 = vld [vmem:[#allocation2 + $0x78] sm:$0xff]  }
  0x32   :  { %v1774_v33 = vld [vmem:[#allocation2 + $0xe8] sm:$0xff]   ;;  %v1775_v34 = vld [vmem:[#allocation2 + $0xf0] sm:$0xff]   ;;  %v1776_v35 = vld [vmem:[#allocation2 + $0xf8] sm:$0xff]  }
  0x34   :  { %1664 = vmatmul.mubr.msk.bf16.vlgmr.msra.gmra.mrb[0].mxu0 %vm289_vm0, %v1746_v5  ;;  %1696 = vmatmul.mubr.msk.bf16.vlgmr.msra.gmra.mrb[0].mxu1 %vm289_vm0, %v1762_v10 }
  0x35   :  { %1667 = vmatprep.mubr.msk.bf16.mxu0 %vm289_vm0, %v1747_v6  ;;  %1699 = vmatprep.mubr.msk.bf16.mxu1 %vm289_vm0, %v1763_v11 }
  0x3c   :  { %1668 = vmatmul.mubr.msk.bf16.gmra.mrb[4].mxu0 %vm289_vm0, %v1748_v7  ;;  %1700 = vmatmul.mubr.msk.bf16.gmra.mrb[4].mxu1 %vm289_vm0, %v1764_v14 }
  0x3d   :  { %1671 = vmatprep.mubr.msk.bf16.mxu0 %vm289_vm0, %v1749_v8  ;;  %1703 = vmatprep.mubr.msk.bf16.mxu1 %vm289_vm0, %v1765_v15 }
  0x44   :  { %1672 = vmatmul.mubr.msk.bf16.gmra.mrb[8].mxu0 %vm289_vm0, %v1750_v12  ;;  %1704 = vmatmul.mubr.msk.bf16.gmra.mrb[8].mxu1 %vm289_vm0, %v1766_v17 }
  0x45   :  { %1675 = vmatprep.mubr.msk.bf16.mxu0 %vm289_vm0, %v1751_v13  ;;  %1707 = vmatprep.mubr.msk.bf16.mxu1 %vm289_vm0, %v1767_v19 }
  0x4c   :  { %1676 = vmatmul.mubr.msk.bf16.gmra.mrb[12].mxu0 %vm289_vm0, %v1752_v16  ;;  %1708 = vmatmul.mubr.msk.bf16.gmra.mrb[12].mxu1 %vm289_vm0, %v1768_v21 }
  0x4d   :  { %1679 = vmatprep.mubr.msk.bf16.mxu0 %vm289_vm0, %v1753_v18  ;;  %1711 = vmatprep.mubr.msk.bf16.mxu1 %vm289_vm0, %v1769_v23 }
  0x54   :  { %1680 = vmatmul.mubr.msk.bf16.gmra.mrb[16].mxu0 %vm289_vm0, %v1754_v20  ;;  %1712 = vmatmul.mubr.msk.bf16.gmra.mrb[16].mxu1 %vm289_vm0, %v1770_v25 }
  0x55   :  { %1683 = vmatprep.mubr.msk.bf16.mxu0 %vm289_vm0, %v1755_v22  ;;  %1715 = vmatprep.mubr.msk.bf16.mxu1 %vm289_vm0, %v1771_v27 }
  0x5c   :  { %1684 = vmatmul.mubr.msk.bf16.gmra.mrb[20].mxu0 %vm289_vm0, %v1756_v24  ;;  %1716 = vmatmul.mubr.msk.bf16.gmra.mrb[20].mxu1 %vm289_vm0, %v1772_v29 }
  0x5d   :  { %1687 = vmatprep.mubr.msk.bf16.mxu0 %vm289_vm0, %v1757_v26  ;;  %1719 = vmatprep.mubr.msk.bf16.mxu1 %vm289_vm0, %v1773_v31 }
  0x64   :  { %1688 = vmatmul.mubr.msk.bf16.gmra.mrb[24].mxu0 %vm289_vm0, %v1758_v28  ;;  %1720 = vmatmul.mubr.msk.bf16.gmra.mrb[24].mxu1 %vm289_vm0, %v1774_v33 }
  0x65   :  { %1691 = vmatprep.mubr.msk.bf16.mxu0 %vm289_vm0, %v1759_v30  ;;  %1723 = vmatprep.mubr.msk.bf16.mxu1 %vm289_vm0, %v1775_v34 }
  0x6c   :  { %1692 = vmatmul.mubr.msk.bf16.gmra.mrb[28].mxu0 %vm289_vm0, %v1760_v32  ;;  %1724 = vmatmul.mubr.msk.bf16.gmra.mrb[28].mxu1 %vm289_vm0, %v1776_v35 }
 0x107   :  { %v1665_v36 = vpop.f32.mrb[0].mxu0  ;;  %v1989_v52 = vpop.f32.mrb[0].mxu1 }
 0x108   :  { %v424_v37 = vpop.f32.mrb[1].mxu0  ;;  %v1065_v45 = vmul.f32 %v1665_v36, %v1665_v36  ;;  %v1991_v54 = vpop.f32.mrb[1].mxu1 }
 0x109   :  { %v1666_v38 = vpop.f32.mrb[2].mxu0  ;;  %v1063_v41 = vmul.f32 %v424_v37, %v424_v37  ;;  %v1993_v59 = vpop.f32.mrb[2].mxu1 }
 0x10a   :  { %v1439_v39 = vpack.c.bf16 %v1666_v38, %v1665_v36  ;;  %v427_v40 = vpop.f32.mrb[3].mxu0  ;;  %v1066_v48 = vmul.f32 %v1666_v38, %v1666_v38  ;;  %v1519_v62 = vpack.c.bf16 %v1993_v59, %v1989_v52  ;;  %v1997_v63 = vpop.f32.mrb[3].mxu1 }
 0x10b   :  { %v1434_v42 = vpack.c.bf16 %v427_v40, %v424_v37  ;;  %v999_v43 = vadd.f32 %v427_v40, %v424_v37  ;;  %v1064_v44 = vmul.f32 %v427_v40, %v427_v40  ;;  %v1514_v4 = vpack.c.bf16 %v1997_v63, %v1991_v54 }
 0x10c   :  { %1591 = vst [vmem:[#allocation7 + $0x8] sm:$0xff] %v1439_v39   ;;  %1607 = vst [vmem:[#allocation7 + $0x88] sm:$0xff] %v1519_v62  }
 0x10d   :  { %1435 = vst [vmem:[#allocation7] sm:$0xff] %v1434_v42   ;;  %v1000_v46 = vadd.f32 %v1665_v36, %v999_v43  ;;  %v1127_v47 = vadd.f32 %v1064_v44, %v1063_v41  ;;  %1606 = vst [vmem:[#allocation7 + $0x80] sm:$0xff] %v1514_v4  }
 0x10f   :  { %v1128_v49 = vadd.f32 %v1127_v47, %v1065_v45  ;;  %v1669_v50 = vpop.f32.mrb[4].mxu0  ;;  %v1001_v51 = vadd.f32 %v1666_v38, %v1000_v46  ;;  %v2001_v12 = vpop.f32.mrb[4].mxu1 }
 0x110   :  { %v440_v53 = vpop.f32.mrb[5].mxu0  ;;  %v1069_v5 = vmul.f32 %v1669_v50, %v1669_v50  ;;  %v2003_v14 = vpop.f32.mrb[5].mxu1 }
 0x111   :  { %v1002_v55 = vadd.f32 %v1001_v51, %v440_v53  ;;  %v1067_v56 = vmul.f32 %v440_v53, %v440_v53  ;;  %v1129_v57 = vadd.f32 %v1128_v49, %v1066_v48  ;;  %v1670_v58 = vpop.f32.mrb[6].mxu0  ;;  %v2005_v19 = vpop.f32.mrb[6].mxu1 }
 0x112   :  { %v1449_v60 = vpack.c.bf16 %v1670_v58, %v1669_v50  ;;  %v443_v61 = vpop.f32.mrb[7].mxu0  ;;  %v1070_v8 = vmul.f32 %v1670_v58, %v1670_v58  ;;  %v1529_v22 = vpack.c.bf16 %v2005_v19, %v2001_v12  ;;  %v2009_v23 = vpop.f32.mrb[7].mxu1 }
 0x113   :  { %v1130_v0 = vadd.f32 %v1129_v57, %v1067_v56  ;;  %v1444_v1 = vpack.c.bf16 %v443_v61, %v440_v53  ;;  %v1003_v2 = vadd.f32 %v1002_v55, %v443_v61  ;;  %v1068_v3 = vmul.f32 %v443_v61, %v443_v61 }
 0x114   :  { %1593 = vst [vmem:[#allocation7 + $0x18] sm:$0xff] %v1449_v60   ;;  %1609 = vst [vmem:[#allocation7 + $0x98] sm:$0xff] %v1529_v22   ;;  %v1524_v28 = vpack.c.bf16 %v2009_v23, %v2003_v14 }
 0x115   :  { %1592 = vst [vmem:[#allocation7 + $0x10] sm:$0xff] %v1444_v1   ;;  %v1004_v6 = vadd.f32 %v1669_v50, %v1003_v2  ;;  %v1131_v7 = vadd.f32 %v1130_v0, %v1068_v3 }
 0x116   :  { %1608 = vst [vmem:[#allocation7 + $0x90] sm:$0xff] %v1524_v28  }
 0x117   :  { %v1132_v9 = vadd.f32 %v1131_v7, %v1069_v5  ;;  %v1673_v10 = vpop.f32.mrb[8].mxu0  ;;  %v1005_v11 = vadd.f32 %v1670_v58, %v1004_v6  ;;  %v2013_v36 = vpop.f32.mrb[8].mxu1 }
 0x118   :  { %v456_v13 = vpop.f32.mrb[9].mxu0  ;;  %v1073_v29 = vmul.f32 %v1673_v10, %v1673_v10  ;;  %v2015_v38 = vpop.f32.mrb[9].mxu1 }
 0x119   :  { %v1006_v15 = vadd.f32 %v1005_v11, %v456_v13  ;;  %v1071_v16 = vmul.f32 %v456_v13, %v456_v13  ;;  %v1133_v17 = vadd.f32 %v1132_v9, %v1070_v8  ;;  %v1674_v18 = vpop.f32.mrb[10].mxu0  ;;  %v2017_v43 = vpop.f32.mrb[10].mxu1 }
 0x11a   :  { %v1459_v20 = vpack.c.bf16 %v1674_v18, %v1673_v10  ;;  %v459_v21 = vpop.f32.mrb[11].mxu0  ;;  %v1074_v32 = vmul.f32 %v1674_v18, %v1674_v18  ;;  %v1539_v46 = vpack.c.bf16 %v2017_v43, %v2013_v36  ;;  %v2021_v47 = vpop.f32.mrb[11].mxu1 }
 0x11b   :  { %v1134_v24 = vadd.f32 %v1133_v17, %v1071_v16  ;;  %v1454_v25 = vpack.c.bf16 %v459_v21, %v456_v13  ;;  %v1007_v26 = vadd.f32 %v1006_v15, %v459_v21  ;;  %v1072_v27 = vmul.f32 %v459_v21, %v459_v21 }
 0x11c   :  { %1595 = vst [vmem:[#allocation7 + $0x28] sm:$0xff] %v1459_v20   ;;  %1611 = vst [vmem:[#allocation7 + $0xa8] sm:$0xff] %v1539_v46   ;;  %v1534_v53 = vpack.c.bf16 %v2021_v47, %v2015_v38 }
 0x11d   :  { %1594 = vst [vmem:[#allocation7 + $0x20] sm:$0xff] %v1454_v25   ;;  %v1008_v30 = vadd.f32 %v1673_v10, %v1007_v26  ;;  %v1135_v31 = vadd.f32 %v1134_v24, %v1072_v27 }
 0x11e   :  { %1610 = vst [vmem:[#allocation7 + $0xa0] sm:$0xff] %v1534_v53  }
 0x11f   :  { %v1136_v33 = vadd.f32 %v1135_v31, %v1073_v29  ;;  %v1677_v34 = vpop.f32.mrb[12].mxu0  ;;  %v1009_v35 = vadd.f32 %v1674_v18, %v1008_v30  ;;  %v2025_v0 = vpop.f32.mrb[12].mxu1 }
 0x120   :  { %v472_v37 = vpop.f32.mrb[13].mxu0  ;;  %v1077_v55 = vmul.f32 %v1677_v34, %v1677_v34  ;;  %v2027_v2 = vpop.f32.mrb[13].mxu1 }
 0x121   :  { %v1010_v39 = vadd.f32 %v1009_v35, %v472_v37  ;;  %v1075_v40 = vmul.f32 %v472_v37, %v472_v37  ;;  %v1137_v41 = vadd.f32 %v1136_v33, %v1074_v32  ;;  %v1678_v42 = vpop.f32.mrb[14].mxu0  ;;  %v2029_v7 = vpop.f32.mrb[14].mxu1 }
 0x122   :  { %v1469_v44 = vpack.c.bf16 %v1678_v42, %v1677_v34  ;;  %v475_v45 = vpop.f32.mrb[15].mxu0  ;;  %v1078_v58 = vmul.f32 %v1678_v42, %v1678_v42  ;;  %v1549_v10 = vpack.c.bf16 %v2029_v7, %v2025_v0  ;;  %v2033_v11 = vpop.f32.mrb[15].mxu1 }
 0x123   :  { %v1138_v48 = vadd.f32 %v1137_v41, %v1075_v40  ;;  %v1464_v49 = vpack.c.bf16 %v475_v45, %v472_v37  ;;  %v1011_v50 = vadd.f32 %v1010_v39, %v475_v45  ;;  %v1076_v51 = vmul.f32 %v475_v45, %v475_v45 }
 0x124   :  { %1597 = vst [vmem:[#allocation7 + $0x38] sm:$0xff] %v1469_v44   ;;  %1613 = vst [vmem:[#allocation7 + $0xb8] sm:$0xff] %v1549_v10   ;;  %v1544_v18 = vpack.c.bf16 %v2033_v11, %v2027_v2 }
 0x125   :  { %1596 = vst [vmem:[#allocation7 + $0x30] sm:$0xff] %v1464_v49   ;;  %v1012_v56 = vadd.f32 %v1677_v34, %v1011_v50  ;;  %v1139_v57 = vadd.f32 %v1138_v48, %v1076_v51 }
 0x126   :  { %1612 = vst [vmem:[#allocation7 + $0xb0] sm:$0xff] %v1544_v18  }
 0x127   :  { %v1140_v60 = vadd.f32 %v1139_v57, %v1077_v55  ;;  %v1681_v61 = vpop.f32.mrb[16].mxu0  ;;  %v1013_v62 = vadd.f32 %v1678_v42, %v1012_v56  ;;  %v2037_v28 = vpop.f32.mrb[16].mxu1 }
 0x128   :  { %v488_v1 = vpop.f32.mrb[17].mxu0  ;;  %v1081_v20 = vmul.f32 %v1681_v61, %v1681_v61  ;;  %v2039_v30 = vpop.f32.mrb[17].mxu1 }
 0x129   :  { %v1014_v3 = vadd.f32 %v1013_v62, %v488_v1  ;;  %v1079_v4 = vmul.f32 %v488_v1, %v488_v1  ;;  %v1141_v5 = vadd.f32 %v1140_v60, %v1078_v58  ;;  %v1682_v6 = vpop.f32.mrb[18].mxu0  ;;  %v2041_v35 = vpop.f32.mrb[18].mxu1 }
 0x12a   :  { %v1479_v8 = vpack.c.bf16 %v1682_v6, %v1681_v61  ;;  %v491_v9 = vpop.f32.mrb[19].mxu0  ;;  %v1082_v24 = vmul.f32 %v1682_v6, %v1682_v6  ;;  %v1559_v40 = vpack.c.bf16 %v2041_v35, %v2037_v28  ;;  %v2045_v41 = vpop.f32.mrb[19].mxu1 }
 0x12b   :  { %v1142_v13 = vadd.f32 %v1141_v5, %v1079_v4  ;;  %v1474_v15 = vpack.c.bf16 %v491_v9, %v488_v1  ;;  %v1015_v16 = vadd.f32 %v1014_v3, %v491_v9  ;;  %v1080_v17 = vmul.f32 %v491_v9, %v491_v9 }
 0x12c   :  { %1599 = vst [vmem:[#allocation7 + $0x48] sm:$0xff] %v1479_v8   ;;  %1615 = vst [vmem:[#allocation7 + $0xc8] sm:$0xff] %v1559_v40   ;;  %v1554_v48 = vpack.c.bf16 %v2045_v41, %v2039_v30 }
 0x12d   :  { %1598 = vst [vmem:[#allocation7 + $0x40] sm:$0xff] %v1474_v15   ;;  %v1016_v21 = vadd.f32 %v1681_v61, %v1015_v16  ;;  %v1143_v22 = vadd.f32 %v1142_v13, %v1080_v17 }
 0x12e   :  { %1614 = vst [vmem:[#allocation7 + $0xc0] sm:$0xff] %v1554_v48  }
 0x12f   :  { %v1144_v25 = vadd.f32 %v1143_v22, %v1081_v20  ;;  %v1685_v26 = vpop.f32.mrb[20].mxu0  ;;  %v1017_v27 = vadd.f32 %v1682_v6, %v1016_v21  ;;  %v2049_v58 = vpop.f32.mrb[20].mxu1 }
 0x130   :  { %v504_v29 = vpop.f32.mrb[21].mxu0  ;;  %v1085_v49 = vmul.f32 %v1685_v26, %v1685_v26  ;;  %v2051_v61 = vpop.f32.mrb[21].mxu1 }
 0x131   :  { %v1018_v31 = vadd.f32 %v1017_v27, %v504_v29  ;;  %v1083_v32 = vmul.f32 %v504_v29, %v504_v29  ;;  %v1145_v33 = vadd.f32 %v1144_v25, %v1082_v24  ;;  %v1686_v34 = vpop.f32.mrb[22].mxu0  ;;  %v2053_v5 = vpop.f32.mrb[22].mxu1 }
 0x132   :  { %v1489_v37 = vpack.c.bf16 %v1686_v34, %v1685_v26  ;;  %v507_v39 = vpop.f32.mrb[23].mxu0  ;;  %v1086_v53 = vmul.f32 %v1686_v34, %v1686_v34  ;;  %v1569_v9 = vpack.c.bf16 %v2053_v5, %v2049_v58  ;;  %v2057_v10 = vpop.f32.mrb[23].mxu1 }
 0x133   :  { %v1146_v42 = vadd.f32 %v1145_v33, %v1083_v32  ;;  %v1484_v44 = vpack.c.bf16 %v507_v39, %v504_v29  ;;  %v1019_v45 = vadd.f32 %v1018_v31, %v507_v39  ;;  %v1084_v46 = vmul.f32 %v507_v39, %v507_v39 }
 0x134   :  { %1601 = vst [vmem:[#allocation7 + $0x58] sm:$0xff] %v1489_v37   ;;  %1617 = vst [vmem:[#allocation7 + $0xd8] sm:$0xff] %v1569_v9   ;;  %v1564_v18 = vpack.c.bf16 %v2057_v10, %v2051_v61 }
 0x135   :  { %1600 = vst [vmem:[#allocation7 + $0x50] sm:$0xff] %v1484_v44   ;;  %v1020_v50 = vadd.f32 %v1685_v26, %v1019_v45  ;;  %v1147_v51 = vadd.f32 %v1146_v42, %v1084_v46 }
 0x136   :  { %1616 = vst [vmem:[#allocation7 + $0xd0] sm:$0xff] %v1564_v18  }
 0x137   :  { %v1148_v55 = vadd.f32 %v1147_v51, %v1085_v49  ;;  %v1689_v56 = vpop.f32.mrb[24].mxu0  ;;  %v1021_v57 = vadd.f32 %v1686_v34, %v1020_v50  ;;  %v2061_v29 = vpop.f32.mrb[24].mxu1 }
 0x138   :  { %v520_v60 = vpop.f32.mrb[25].mxu0  ;;  %v1089_v20 = vmul.f32 %v1689_v56, %v1689_v56  ;;  %v2063_v32 = vpop.f32.mrb[25].mxu1 }
 0x139   :  { %v1022_v62 = vadd.f32 %v1021_v57, %v520_v60  ;;  %v1087_v1 = vmul.f32 %v520_v60, %v520_v60  ;;  %v1149_v3 = vadd.f32 %v1148_v55, %v1086_v53  ;;  %v1690_v4 = vpop.f32.mrb[26].mxu0  ;;  %v2065_v40 = vpop.f32.mrb[26].mxu1 }
 0x13a   :  { %v1499_v6 = vpack.c.bf16 %v1690_v4, %v1689_v56  ;;  %v523_v8 = vpop.f32.mrb[27].mxu0  ;;  %v1090_v24 = vmul.f32 %v1690_v4, %v1690_v4  ;;  %v1579_v45 = vpack.c.bf16 %v2065_v40, %v2061_v29  ;;  %v2069_v46 = vpop.f32.mrb[27].mxu1 }
 0x13b   :  { %v1150_v13 = vadd.f32 %v1149_v3, %v1087_v1  ;;  %v1494_v15 = vpack.c.bf16 %v523_v8, %v520_v60  ;;  %v1023_v16 = vadd.f32 %v1022_v62, %v523_v8  ;;  %v1088_v17 = vmul.f32 %v523_v8, %v523_v8 }
 0x13c   :  { %1603 = vst [vmem:[#allocation7 + $0x68] sm:$0xff] %v1499_v6   ;;  %1619 = vst [vmem:[#allocation7 + $0xe8] sm:$0xff] %v1579_v45   ;;  %v1574_v53 = vpack.c.bf16 %v2069_v46, %v2063_v32  ;;  %v1095_v3 = vmul.f32 %v1991_v54, %v1991_v54 }
 0x13d   :  { %1602 = vst [vmem:[#allocation7 + $0x60] sm:$0xff] %v1494_v15   ;;  %v1024_v21 = vadd.f32 %v1689_v56, %v1023_v16  ;;  %v1151_v22 = vadd.f32 %v1150_v13, %v1088_v17 }
 0x13e   :  { %1618 = vst [vmem:[#allocation7 + $0xe0] sm:$0xff] %v1574_v53  }
 0x13f   :  { %v1152_v25 = vadd.f32 %v1151_v22, %v1089_v20  ;;  %v1693_v26 = vpop.f32.mrb[28].mxu0  ;;  %v1025_v27 = vadd.f32 %v1690_v4, %v1024_v21  ;;  %v2075_v4 = vpop.f32.mrb[28].mxu1  ;;  %v1096_v20 = vmul.f32 %v1997_v63, %v1997_v63 }
 0x140   :  { %v536_v31 = vpop.f32.mrb[29].mxu0  ;;  %v1093_v55 = vmul.f32 %v1693_v26, %v1693_v26  ;;  %v2077_v6 = vpop.f32.mrb[29].mxu1 }
 0x141   :  { %v1026_v33 = vadd.f32 %v1025_v27, %v536_v31  ;;  %v1091_v34 = vmul.f32 %v536_v31, %v536_v31  ;;  %v1153_v37 = vadd.f32 %v1152_v25, %v1090_v24  ;;  %v1694_v39 = vpop.f32.mrb[30].mxu0  ;;  %v2080_v13 = vpop.f32.mrb[30].mxu1 }
 0x142   :  { %v1509_v42 = vpack.c.bf16 %v1694_v39, %v1693_v26  ;;  %v539_v44 = vpop.f32.mrb[31].mxu0  ;;  %v1094_v60 = vmul.f32 %v1694_v39, %v1694_v39  ;;  %v1589_v15 = vpack.c.bf16 %v2080_v13, %v2075_v4  ;;  %v2084_v16 = vpop.f32.mrb[31].mxu1 }
 0x143   :  { %v1154_v48 = vadd.f32 %v1153_v37, %v1091_v34  ;;  %v1504_v49 = vpack.c.bf16 %v539_v44, %v536_v31  ;;  %v1027_v50 = vadd.f32 %v1026_v33, %v539_v44  ;;  %v1092_v51 = vmul.f32 %v539_v44, %v539_v44 }
 0x144   :  { %1605 = vst [vmem:[#allocation7 + $0x78] sm:$0xff] %v1509_v42   ;;  %v1584_v21 = vpack.c.bf16 %v2084_v16, %v2077_v6  ;;  %1621 = vst [vmem:[#allocation7 + $0xf8] sm:$0xff] %v1589_v15  }
 0x145   :  { %1604 = vst [vmem:[#allocation7 + $0x70] sm:$0xff] %v1504_v49   ;;  %v1028_v56 = vadd.f32 %v1693_v26, %v1027_v50  ;;  %v1155_v57 = vadd.f32 %v1154_v48, %v1092_v51 }
 0x146   :  { %1620 = vst [vmem:[#allocation7 + $0xf0] sm:$0xff] %v1584_v21  }
 0x147   :  { %v1156_v62 = vadd.f32 %v1155_v57, %v1093_v55  ;;  %v1029_v1 = vadd.f32 %v1694_v39, %v1028_v56 }
 0x149   :  { %v1030_v8 = vadd.f32 %v1029_v1, %v1991_v54  ;;  %v1157_v9 = vadd.f32 %v1156_v62, %v1094_v60  ;;  %v1097_v54 = vmul.f32 %v1989_v52, %v1989_v52 }
 0x14b   :  { %v1158_v17 = vadd.f32 %v1157_v9, %v1095_v3  ;;  %v1031_v18 = vadd.f32 %v1030_v8, %v1997_v63 }
 0x14d   :  { %v1032_v22 = vadd.f32 %v1989_v52, %v1031_v18  ;;  %v1159_v24 = vadd.f32 %v1158_v17, %v1096_v20 }
 0x14e   :  { %1832 = shalt.err (!%p1829_p6)
}
 0x14f   :  { %s1833_s18 = scalar_lea.hbm %s2222_s2, 4096 }
 0x150   :  { %p1834_p7 = scmp.ne.s32.totalorder %s2222_s2, %s1833_s18  ;;  %p1837_p8 = scmp.lt.u32.totalorder %s1833_s18, %s2222_s2 }
 0x152   :  { %p1839_p9 = pnand %p1837_p8, %p1834_p7 }
 0x154   :  { %1842 = shalt.err (!%p1839_p9)
}
 0x155   :  { %1202 = dma.vmem_to_hbm [thread:$0]  %s1197_s14, 4096, %s2222_s2, [#allocation4], %s1896_s25, %s1896_s25, %s1897_s26   ;;  %v1098_v52 = vmul.f32 %v1993_v59, %v1993_v59  ;;  %v1160_v63 = vadd.f32 %v1159_v24, %v1097_v54  ;;  %v1033_v25 = vadd.f32 %v1993_v59, %v1032_v22  ;;  %v1099_v26 = vmul.f32 %v2003_v14, %v2003_v14 }
 0x156   :  { %v1100_v37 = vmul.f32 %v2009_v23, %v2009_v23  ;;  %v1101_v39 = vmul.f32 %v2001_v12, %v2001_v12  ;;  %v1102_v59 = vmul.f32 %v2005_v19, %v2005_v19  ;;  %v1104_v53 = vmul.f32 %v2021_v47, %v2021_v47  ;;  %s1900_s2 = smov [#allocation8]   ;;  %s1901_s26 = smov [#allocation10]  }
 0x157   :  { %v1034_v27 = vadd.f32 %v1033_v25, %v2003_v14  ;;  %v1161_v31 = vadd.f32 %v1160_v63, %v1098_v52  ;;  %v1103_v14 = vmul.f32 %v2015_v38, %v2015_v38  ;;  %v1108_v8 = vmul.f32 %v2033_v11, %v2033_v11  ;;  %s1209_s25 = sshll.u32 %s1900_s2, 4  ;;  %s1219_s27 = sshll.u32 %s1901_s26, 4  ;;  %s1210_s25 = int_to_ptr.vmem [resolvable:$true] %s1209_s25  ;;  %s1220_s27 = int_to_ptr.vmem [resolvable:$true] %s1219_s27 }
 0x158   :  { %v1112_v22 = vmul.f32 %v2045_v41, %v2045_v41  ;;  %s1843_s28 = scalar_lea.vmem %s1210_s25, 128  ;;  %p1848_p11 = scmp.lt.s32.totalorder %s1210_s25, %s1210_s25 }
 0x159   :  { %v1162_v33 = vadd.f32 %v1161_v31, %v1099_v26  ;;  %v1035_v34 = vadd.f32 %v1034_v27, %v2009_v23  ;;  %p1844_p10 = scmp.ne.s32.totalorder %s1210_s25, %s1843_s28  ;;  %p1849_p12 = scmp.lt.s32.totalorder %s1843_s28, %s1843_s28 }
 0x15b   :  { %v1036_v42 = vadd.f32 %v2001_v12, %v1035_v34  ;;  %v1163_v44 = vadd.f32 %v1162_v33, %v1100_v37  ;;  %v1105_v12 = vmul.f32 %v2013_v36, %v2013_v36  ;;  %v1116_v33 = vmul.f32 %v2057_v10, %v2057_v10  ;;  %p1850_p13 = por %p1849_p12, %p1848_p11 }
 0x15d   :  { %v1164_v45 = vadd.f32 %v1163_v44, %v1101_v39  ;;  %v1037_v48 = vadd.f32 %v2005_v19, %v1036_v42  ;;  %v1106_v19 = vmul.f32 %v2017_v43, %v2017_v43  ;;  %p1851_p0 = pnand %p1850_p13, %p1844_p10 }
 0x15f   :  { %v1038_v49 = vadd.f32 %v1037_v48, %v2015_v38  ;;  %v1165_v50 = vadd.f32 %v1164_v45, %v1102_v59  ;;  %v1107_v38 = vmul.f32 %v2027_v2, %v2027_v2  ;;  %v1120_v48 = vmul.f32 %v2069_v46, %v2069_v46 }
 0x161   :  { %v1166_v51 = vadd.f32 %v1165_v50, %v1103_v14  ;;  %v1039_v23 = vadd.f32 %v1038_v49, %v2021_v47 }
 0x163   :  { %v1040_v55 = vadd.f32 %v2013_v36, %v1039_v23  ;;  %v1167_v56 = vadd.f32 %v1166_v51, %v1104_v53  ;;  %v1109_v36 = vmul.f32 %v2025_v0, %v2025_v0 }
 0x165   :  { %v1168_v57 = vadd.f32 %v1167_v56, %v1105_v12  ;;  %v1041_v60 = vadd.f32 %v2017_v43, %v1040_v55  ;;  %v1110_v43 = vmul.f32 %v2029_v7, %v2029_v7  ;;  %v1124_v55 = vmul.f32 %v2084_v16, %v2084_v16 }
 0x167   :  { %v1042_v62 = vadd.f32 %v1041_v60, %v2027_v2  ;;  %v1169_v1 = vadd.f32 %v1168_v57, %v1106_v19  ;;  %v1111_v2 = vmul.f32 %v2039_v30, %v2039_v30 }
 0x169   :  { %v1170_v3 = vadd.f32 %v1169_v1, %v1107_v38  ;;  %v1043_v47 = vadd.f32 %v1042_v62, %v2033_v11 }
 0x16b   :  { %v1044_v9 = vadd.f32 %v2025_v0, %v1043_v47  ;;  %v1171_v15 = vadd.f32 %v1170_v3, %v1108_v8  ;;  %v1113_v0 = vmul.f32 %v2037_v28, %v2037_v28 }
 0x16d   :  { %v1172_v17 = vadd.f32 %v1171_v15, %v1109_v36  ;;  %v1045_v18 = vadd.f32 %v2029_v7, %v1044_v9  ;;  %v1114_v7 = vmul.f32 %v2041_v35, %v2041_v35 }
 0x16f   :  { %v1046_v20 = vadd.f32 %v1045_v18, %v2039_v30  ;;  %v1173_v21 = vadd.f32 %v1172_v17, %v1110_v43  ;;  %v1115_v30 = vmul.f32 %v2051_v61, %v2051_v61 }
 0x171   :  { %v1174_v54 = vadd.f32 %v1173_v21, %v1111_v2  ;;  %v1047_v11 = vadd.f32 %v1046_v20, %v2045_v41 }
 0x173   :  { %v1048_v24 = vadd.f32 %v2037_v28, %v1047_v11  ;;  %v1175_v52 = vadd.f32 %v1174_v54, %v1112_v22  ;;  %v1117_v28 = vmul.f32 %v2049_v58, %v2049_v58 }
 0x175   :  { %v1176_v63 = vadd.f32 %v1175_v52, %v1113_v0  ;;  %v1049_v25 = vadd.f32 %v2041_v35, %v1048_v24  ;;  %v1118_v35 = vmul.f32 %v2053_v5, %v2053_v5 }
 0x177   :  { %v1050_v26 = vadd.f32 %v1049_v25, %v2051_v61  ;;  %v1177_v27 = vadd.f32 %v1176_v63, %v1114_v7  ;;  %v1119_v61 = vmul.f32 %v2063_v32, %v2063_v32 }
 0x179   :  { %v1178_v31 = vadd.f32 %v1177_v27, %v1115_v30  ;;  %v1051_v41 = vadd.f32 %v1050_v26, %v2057_v10 }
 0x17b   :  { %v1052_v34 = vadd.f32 %v2049_v58, %v1051_v41  ;;  %v1179_v37 = vadd.f32 %v1178_v31, %v1116_v33  ;;  %v1121_v58 = vmul.f32 %v2061_v29, %v2061_v29 }
 0x17d   :  { %v1180_v39 = vadd.f32 %v1179_v37, %v1117_v28  ;;  %v1053_v42 = vadd.f32 %v2053_v5, %v1052_v34  ;;  %v1122_v5 = vmul.f32 %v2065_v40, %v2065_v40 }
 0x17f   :  { %v1054_v44 = vadd.f32 %v1053_v42, %v2063_v32  ;;  %v1181_v59 = vadd.f32 %v1180_v39, %v1118_v35  ;;  %v1123_v32 = vmul.f32 %v2077_v6, %v2077_v6 }
 0x181   :  { %v1182_v45 = vadd.f32 %v1181_v59, %v1119_v61  ;;  %v1055_v10 = vadd.f32 %v1054_v44, %v2069_v46 }
 0x183   :  { %v1056_v14 = vadd.f32 %v2061_v29, %v1055_v10  ;;  %v1183_v49 = vadd.f32 %v1182_v45, %v1120_v48  ;;  %v1125_v29 = vmul.f32 %v2075_v4, %v2075_v4 }
 0x185   :  { %v1184_v50 = vadd.f32 %v1183_v49, %v1121_v58  ;;  %v1057_v51 = vadd.f32 %v2065_v40, %v1056_v14 }
 0x187   :  { %v1058_v23 = vadd.f32 %v1057_v51, %v2077_v6  ;;  %v1185_v53 = vadd.f32 %v1184_v50, %v1122_v5  ;;  %v1126_v6 = vmul.f32 %v2080_v13, %v2080_v13 }
 0x189   :  { %v1186_v12 = vadd.f32 %v1185_v53, %v1123_v32  ;;  %v1059_v46 = vadd.f32 %v1058_v23, %v2084_v16 }
 0x18b   :  { %v1060_v56 = vadd.f32 %v2075_v4, %v1059_v46  ;;  %v1187_v40 = vadd.f32 %v1186_v12, %v1124_v55 }
 0x18d   :  { %v1188_v19 = vadd.f32 %v1187_v40, %v1125_v29  ;;  %v1061_v57 = vadd.f32 %v2080_v13, %v1060_v56 }
 0x18f   :  { %1062 = vst [vmem:[#allocation8] sm:$0xff] %v1061_v57  ;;  %v1189_v60 = vadd.f32 %v1188_v19, %v1126_v6 }
 0x190   :  { %1854 = shalt.err (!%p1851_p0)
}
 0x191   :  { %s1855_s5 = scalar_lea.hbm %s2223_s3, 128 }
 0x192   :  { %p1856_p1 = scmp.ne.s32.totalorder %s2223_s3, %s1855_s5  ;;  %p1859_p2 = scmp.lt.u32.totalorder %s1855_s5, %s2223_s3 }
 0x194   :  { %p1861_p3 = pnand %p1859_p2, %p1856_p1 }
 0x196   :  { %1864 = shalt.err (!%p1861_p3)
}
 0x197   :  { %1212 = dma.vmem_to_hbm [thread:$0]  %s1210_s25, 128, %s2223_s3, [#allocation9]   ;;  %1190 = vst [vmem:[#allocation10] sm:$0xff] %v1189_v60 }
 0x198   :  { %s1865_s12 = scalar_lea.vmem %s1220_s27, 128  ;;  %p1870_p5 = scmp.lt.s32.totalorder %s1220_s27, %s1220_s27 }
 0x199   :  { %p1866_p4 = scmp.ne.s32.totalorder %s1220_s27, %s1865_s12  ;;  %p1871_p6 = scmp.lt.s32.totalorder %s1865_s12, %s1865_s12 }
 0x19b   :  { %p1872_p7 = por %p1871_p6, %p1870_p5 }
 0x19d   :  { %p1873_p8 = pnand %p1872_p7, %p1866_p4 }
 0x19f   :  { %1876 = shalt.err (!%p1873_p8)
}
 0x1a0   :  { %s1877_s1 = scalar_lea.hbm %s2224_s4, 128 }
 0x1a1   :  { %p1878_p9 = scmp.ne.s32.totalorder %s2224_s4, %s1877_s1  ;;  %p1881_p10 = scmp.lt.u32.totalorder %s1877_s1, %s2224_s4 }
 0x1a3   :  { %p1883_p11 = pnand %p1881_p10, %p1878_p9 }
 0x1a5   :  { %1886 = shalt.err (!%p1883_p11)
}
 0x1a6   :  { %1222 = dma.vmem_to_hbm [thread:$0]  %s1220_s27, 128, %s2224_s4, [#allocation9]  }
 0x1a7   :  { %1891 = dma.done.wait [#allocation4], 4096  }
 0x1a8   :  { %1892 = vsyncadd [#allocation4], 4294963200 }
 0x1a9   :  { %1893 = dma.done.wait [#allocation9], 256  }
 0x1aa   :  { %1894 = vsyncadd [#allocation9], 4294967040 }
 0x1ab   :  { %1232 = vsyncpa [#allocation3], 1 }
 0x1ac   :  { %1233 = vsyncpa [#allocation6], 1 }
 0x1ad   :  { %1234 = vsyncpa [#allocation4], 1 }
 0x1ae   :  { %1235 = vsyncpa [#allocation9], 1 }

</bundles_post_ra>
